<compile_context>
chip_gen: v7x
topology: tpu7x:2x2x1
jax: 0.10.0
libtpu: 0.0.40
codegen_flags: <defaults>
</compile_context>

<pallas_src>
import numpy as np
import jax
import jax.numpy as jnp
from jax.experimental import pallas as pl
from jax.experimental.pallas import tpu as pltpu


def make_pwl_kernel(zc, slopes, biases, max_val):
    """Build the PWL kernel with all breakpoints/slopes baked in as constants.

    zc      : (K+2,) strictly increasing segment breakpoints (z-centers).
    slopes  : (K+1,) per-segment slopes.
    biases  : (K+1,) per-segment biases b_i = a_i - s_i * c_i.
    """
    zc = tuple(float(v) for v in zc)
    slopes = tuple(float(v) for v in slopes)
    biases = tuple(float(v) for v in biases)
    max_val = float(max_val)
    num_intervals = len(zc) - 1

    def kernel(z_ref, a_ref):
        # Compute in f32 so segment-boundary compares match the f32-fitted
        # tables exactly (cast out at the end).
        z = z_ref[...].astype(jnp.float32)
        a = jnp.zeros_like(z)

        # Last-match-wins overwrite chain: because zc is strictly increasing,
        # for c_i < z <= c_{i+1} the highest satisfied predicate is `z > c_i`,
        # which reproduces the reference's disjoint-mask select with only
        # (cmp, mul, add, select) per segment per element.
        for i in range(num_intervals):
            a = jnp.where(z > zc[i], slopes[i] * z + biases[i], a)

        # In the reference, z > c_last never matched any segment mask (a == 0
        # there), so `max + a` reduces to the constant `max`.
        a = jnp.where(z > zc[num_intervals], max_val, a)
        a_ref[...] = a.astype(a_ref.dtype)

    return kernel


def _choose_block_rows(m, block_rows):
    """Pick block rows: big enough to amortize per-step overhead, a multiple
    of 8 sublanes, and leaving >= 2 grid steps so megacore parts (v7x) can
    shard the single parallel grid axis across both TensorCores."""
    if m <= 8:
        return m
    half = (((m + 1) // 2) + 7) // 8 * 8      # ~m/2, rounded up to sublanes
    br = min(int(block_rows), half)
    return max(8, (br // 8) * 8)


def ann_sampler_forward(z, centers, slopes, max_val, *, block_rows=4096):
    """Pallas implementation of AnnSampler.forward (the _pwl forward).

    `eps` only affects the autograd backward in the torch module; the forward
    ignores it, so it is not an argument here.
    """
    orig_shape = z.shape
    orig_dtype = z.dtype
    lane = 128

    # Fitted tables are host-side numpy (produced by AnnSampler.fit()); keep
    # them in f32 regardless of the activation dtype so the breakpoints don't
    # move relative to the fitted model, and bake them into the kernel.
    centers_f32 = np.asarray(centers, dtype=np.float32)   # (K+2, 2)
    slopes_f32 = np.asarray(slopes, dtype=np.float32)     # (K+1,)
    num_intervals = int(centers_f32.shape[0]) - 1
    zc = centers_f32[:, 0]                                            # (K+2,)
    assert np.all(np.diff(zc) > 0), "PWL breakpoints must be strictly increasing"
    biases = centers_f32[:-1, 1] - slopes_f32 * centers_f32[:-1, 0]   # (K+1,)

    flat = z.reshape(-1)
    n = flat.shape[0]
    lane_pad = (-n) % lane
    if lane_pad:
        # TODO(synk): ragged numel costs an extra pad + slice HBM pass; mask
        # the tail inside the last block instead if this path becomes hot.
        flat = jnp.pad(flat, (0, lane_pad))
    m = flat.shape[0] // lane
    z2 = flat.reshape(m, lane)

    br = _choose_block_rows(m, block_rows)
    grid = (pl.cdiv(m, br),)

    kernel = make_pwl_kernel(zc, slopes_f32, biases, max_val)

    itemsize = np.dtype(orig_dtype).itemsize
    cost = pl.CostEstimate(
        flops=4 * num_intervals * m * lane,
        transcendentals=0,
        bytes_accessed=2 * m * lane * itemsize,
    )

    out = pl.pallas_call(
        kernel,
        out_shape=jax.ShapeDtypeStruct((m, lane), orig_dtype),
        grid=grid,
        in_specs=[pl.BlockSpec((br, lane), lambda i: (i, 0))],
        out_specs=pl.BlockSpec((br, lane), lambda i: (i, 0)),
        compiler_params=pltpu.CompilerParams(
            dimension_semantics=("parallel",)),
        cost_estimate=cost,
    )(z2)

    if lane_pad:
        return out.reshape(-1)[:n].reshape(orig_shape)
    return out.reshape(orig_shape)


def build_fitted_params(num_centers=5, max_val=1.0):
    """Deterministically synthesize the state AnnSampler.fit() would produce.

    Inner centers lie on a smooth monotone curve; the two outer centers and
    the slope vector are derived exactly as in AnnSampler.fit().
    """
    z_c = np.linspace(0.2, 1.0, num_centers)
    a_c = 0.9 * z_c ** 1.2
    inner = np.stack([z_c, a_c], axis=1)

    slopes = (inner[1:, 1] - inner[:-1, 1]) / (inner[1:, 0] - inner[:-1, 0])
    slopes = np.abs(np.concatenate([[slopes[0]], slopes, [slopes[-1]]]))

    centers = np.vstack((
        np.array([inner[0, 0] - inner[0, 1] / slopes[0], 0.0]),
        inner,
        np.array([inner[-1, 0] + (max_val - inner[-1, 1]) / slopes[-1], max_val]),
    ))
    return centers.astype(np.float32), slopes.astype(np.float32)


def reference_pwl(z, centers, slopes, max_val):
    """Pure-numpy reference matching _pwl.forward."""
    a = np.zeros_like(z)
    for i in range(len(centers) - 1):
        a = np.where(
            (z > centers[i, 0]) & (z <= centers[i + 1, 0]),
            centers[i, 1] + slopes[i] * (z - centers[i, 0]),
            a,
        )
    a = np.where(z > centers[-1, 0], max_val + a, a)
    return a


if __name__ == "__main__":
    num_centers = 5
    max_val = 1.0
    # eps only affects backward in the torch module; forward ignores it.
    centers, slopes = build_fitted_params(num_centers=num_centers, max_val=max_val)

    key = jax.random.PRNGKey(0)
    # NCHW input, spanning below / inside / above the fitted segment range.
    z = jax.random.uniform(
        key, (2, 4, 16, 16), dtype=jnp.float32, minval=-0.2, maxval=1.6
    )

    out = ann_sampler_forward(z, centers, slopes, max_val)
    out = jax.block_until_ready(out)

    ref = reference_pwl(np.asarray(z), centers, slopes, max_val)
    np.testing.assert_allclose(np.asarray(out), ref, rtol=1e-5, atol=1e-5)

    print("KERNEL_OK")
</pallas_src>

<mosaic_0001>
module attributes {stable_mosaic.version = 11 : i64} {
  func.func @kernel(%arg0: i32, %arg1: memref<8x128xf32, #tpu.memory_space<vmem>>, %arg2: memref<8x128xf32, #tpu.memory_space<vmem>>) attributes {dimension_semantics = [#tpu.dimension_semantics<parallel>], iteration_bounds = array<i64: 2>, scalar_prefetch = 0 : i64, scratch_operands = 0 : i64, tpu.core_type = #tpu.core_type<tc>, window_params = [{transform_indices = @transform_0, window_bounds = array<i64: 8, 128>}, {transform_indices = @transform_1, window_bounds = array<i64: 8, 128>}]} {
    %c0 = arith.constant 0 : index
    %c0_0 = arith.constant 0 : index
    %0 = vector.load %arg1[%c0, %c0_0] : memref<8x128xf32, #tpu.memory_space<vmem>>, vector<8x128xf32>
    %cst = arith.constant 0.000000e+00 : f32
    %1 = vector.broadcast %cst : f32 to vector<8x128xf32>
    %cst_1 = arith.constant 0.0458451472 : f32
    %2 = vector.broadcast %cst_1 : f32 to vector<8x128xf32>
    %3 = arith.cmpf ogt, %0, %2 : vector<8x128xf32>
    %cst_2 = arith.constant 0.846294105 : f32
    %4 = vector.broadcast %cst_2 : f32 to vector<8x128xf32>
    %5 = arith.mulf %4, %0 : vector<8x128xf32>
    %cst_3 = arith.constant -0.0387984775 : f32
    %6 = vector.broadcast %cst_3 : f32 to vector<8x128xf32>
    %7 = arith.addf %5, %6 : vector<8x128xf32>
    %8 = arith.select %3, %7, %1 : vector<8x128xi1>, vector<8x128xf32>
    %cst_4 = arith.constant 2.000000e-01 : f32
    %9 = vector.broadcast %cst_4 : f32 to vector<8x128xf32>
    %10 = arith.cmpf ogt, %0, %9 : vector<8x128xf32>
    %cst_5 = arith.constant 0.846294105 : f32
    %11 = vector.broadcast %cst_5 : f32 to vector<8x128xf32>
    %12 = arith.mulf %11, %0 : vector<8x128xf32>
    %cst_6 = arith.constant -0.0387984812 : f32
    %13 = vector.broadcast %cst_6 : f32 to vector<8x128xf32>
    %14 = arith.addf %12, %13 : vector<8x128xf32>
    %15 = arith.select %10, %14, %8 : vector<8x128xi1>, vector<8x128xf32>
    %cst_7 = arith.constant 4.000000e-01 : f32
    %16 = vector.broadcast %cst_7 : f32 to vector<8x128xf32>
    %17 = arith.cmpf ogt, %0, %16 : vector<8x128xf32>
    %cst_8 = arith.constant 0.939181447 : f32
    %18 = vector.broadcast %cst_8 : f32 to vector<8x128xf32>
    %19 = arith.mulf %18, %0 : vector<8x128xf32>
    %cst_9 = arith.constant -0.0759534239 : f32
    %20 = vector.broadcast %cst_9 : f32 to vector<8x128xf32>
    %21 = arith.addf %19, %20 : vector<8x128xf32>
    %22 = arith.select %17, %21, %15 : vector<8x128xi1>, vector<8x128xf32>
    %cst_10 = arith.constant 6.000000e-01 : f32
    %23 = vector.broadcast %cst_10 : f32 to vector<8x128xf32>
    %24 = arith.cmpf ogt, %0, %23 : vector<8x128xf32>
    %cst_11 = arith.constant 1.00509179 : f32
    %25 = vector.broadcast %cst_11 : f32 to vector<8x128xf32>
    %26 = arith.mulf %25, %0 : vector<8x128xf32>
    %cst_12 = arith.constant -0.115499675 : f32
    %27 = vector.broadcast %cst_12 : f32 to vector<8x128xf32>
    %28 = arith.addf %26, %27 : vector<8x128xf32>
    %29 = arith.select %24, %28, %22 : vector<8x128xi1>, vector<8x128xf32>
    %cst_13 = arith.constant 8.000000e-01 : f32
    %30 = vector.broadcast %cst_13 : f32 to vector<8x128xf32>
    %31 = arith.cmpf ogt, %0, %30 : vector<8x128xf32>
    %cst_14 = arith.constant 1.05713105 : f32
    %32 = vector.broadcast %cst_14 : f32 to vector<8x128xf32>
    %33 = arith.mulf %32, %0 : vector<8x128xf32>
    %cst_15 = arith.constant -0.157131076 : f32
    %34 = vector.broadcast %cst_15 : f32 to vector<8x128xf32>
    %35 = arith.addf %33, %34 : vector<8x128xf32>
    %36 = arith.select %31, %35, %29 : vector<8x128xi1>, vector<8x128xf32>
    %cst_16 = arith.constant 1.000000e+00 : f32
    %37 = vector.broadcast %cst_16 : f32 to vector<8x128xf32>
    %38 = arith.cmpf ogt, %0, %37 : vector<8x128xf32>
    %cst_17 = arith.constant 1.05713105 : f32
    %39 = vector.broadcast %cst_17 : f32 to vector<8x128xf32>
    %40 = arith.mulf %39, %0 : vector<8x128xf32>
    %cst_18 = arith.constant -0.157131076 : f32
    %41 = vector.broadcast %cst_18 : f32 to vector<8x128xf32>
    %42 = arith.addf %40, %41 : vector<8x128xf32>
    %43 = arith.select %38, %42, %36 : vector<8x128xi1>, vector<8x128xf32>
    %cst_19 = arith.constant 1.09459567 : f32
    %44 = vector.broadcast %cst_19 : f32 to vector<8x128xf32>
    %45 = arith.cmpf ogt, %0, %44 : vector<8x128xf32>
    %cst_20 = arith.constant 1.000000e+00 : f32
    %46 = vector.broadcast %cst_20 : f32 to vector<8x128xf32>
    %47 = arith.select %45, %46, %43 : vector<8x128xi1>, vector<8x128xf32>
    %c0_21 = arith.constant 0 : index
    %c0_22 = arith.constant 0 : index
    %48 = vector.load %arg2[%c0_21, %c0_22] : memref<8x128xf32, #tpu.memory_space<vmem>>, vector<8x128xf32>
    tpu.vector_store %arg2[%c0_21, %c0_22], %47 {strides = array<i32>} : memref<8x128xf32, #tpu.memory_space<vmem>>, vector<8x128xf32>,
    return
  }
  func.func @transform_0(%arg0: i32) -> (i32, i32) {
    %c0_i32 = arith.constant 0 : i32
    %c0_i32_0 = arith.constant 0 : i32
    return %arg0, %c0_i32 : i32, i32
  }
  func.func @transform_1(%arg0: i32) -> (i32, i32) {
    %c0_i32 = arith.constant 0 : i32
    %c0_i32_0 = arith.constant 0 : i32
    return %arg0, %c0_i32 : i32, i32
  }
}

</mosaic_0001>

<bundles_post_ra>
// kernel: tpu_custom_call.1
= control target key start
LH: loop header
LB: loop body
LE: loop exit
PB: predicated region body
PF: predicated region fallthrough
CT: control target
= control target key end

     0   :  { %6 = vsyncpa [#allocation3], 0  ;;  %s570_s0 = inlined_call_operand.hbm [shape: f32[16,128], index: 0, kind: input, shape index: {}]   ;;  %s571_s1 = inlined_call_operand.hbm [shape: f32[16,128], index: 1, kind: output, shape index: {}]  }
   0x1   :  { %8 = vsyncpa [#allocation3 + $0x1], 0 }
   0x2   :  { %9 = vsyncpa [#allocation4], 0 }
   0x3   :  { %11 = vsyncpa [#allocation4 + $0x1], 0  ;;  %s409_s6 = smov 0   ;;  %s411_s7 = smov 0  }
   0x4   :  { %s413_s8 = smov 0   ;;  %s415_s9 = smov 0  }
   0x5 LB: > { %s430_s10 = sadd.s32 4294967295, %s395_s9   ;;  %s241_s11 = sadd.s32 4294967294, %s395_s9   ;;  %s395_s9 = sphi %s415_s9, %s586_s9   ;;  %s391_s8 = sphi %s413_s8, %s585_s8   ;;  %s387_s7 = sphi %s411_s7, %s584_s7   ;;  %s383_s6 = sphi %s409_s6, %s583_s6  }
   0x6   : > { %s434_s12 = sadd.s32 1, %s395_s9   ;;  %s24_s13 = sadd.s32 1, %s391_s8 }
   0x7   : > { %s21_s14 = ssub.s32 %s395_s9, %s434_s12  ;;  %p31_p0 = scmp.ne.s32.totalorder %s391_s8, %s387_s7 }
   0x8   : > { %p22_p1 = scmp.eq.s32.totalorder %s21_s14, 0  ;;  %p32_p2 = scmp.eq.s32.totalorder %s395_s9, 0 }
   0x9   : > { %p37_p3 = scmp.ne.s32.totalorder %s387_s7, %s383_s6  ;;  %p38_p4 = scmp.eq.s32.totalorder %s430_s10, 0 }
   0xa   : > { %s446_s15 = scalar_select %p22_p1, %s391_s8, %s24_s13  }
   0xb   : > { %p448_p5 = por %p32_p2, %p31_p0  ;;  %p452_p6 = por %p38_p4, %p37_p3 }
   0xc   : > { %p61_p7 = scmp.eq.s32.totalorder %s430_s10, 1  ;;  %p67_p8 = scmp.eq.s32.totalorder %s241_s11, 1 }
   0xd   : > { %p265_p10 = scmp.lt.s32.totalorder %s395_s9, 2  ;;  %s87_s20 = sand.u32 1, %s391_s8  }
   0xe   : > { %p459_p11 = por %p61_p7, %p31_p0  ;;  %p463_p12 = por %p67_p8, %p37_p3 }
   0xf   : > { %s245_s21 = sshll.u32 %s395_s9, 7  ;;  %s244_s22 = sshll.u32 %s87_s20, 3 }
  0x10   : > { %s575_s18 = scalar_select %p459_p11, 1, 0 }
  0x11   : > { %s576_s19 = scalar_select %p463_p12, 1, 0 }
  0x12   : > { %s472_s25 = scalar_lea.hbm %s570_s0, %s245_s21  ;;  %s91_s26 = scalar_lea.vmem [#allocation2], %s244_s22 }
  0x13   : > { %s98_s27 = sshll.u32 %s91_s26, 4  ;;  %p476_p13 = pnand %p265_p10, %p448_p5  ;;  %s480_s27 = int_to_ptr.vmem [resolvable:$true] %s98_s27 }
  0x14   : > { %s88_s29 = scalar_lea.sflag [#allocation3], %s87_s20  ;;  %s299_s30 = scalar_lea.hbm %s472_s25, 128 }
  0x15   : > { %p300_p2 = scmp.ne.s32.totalorder %s472_s25, %s299_s30  ;;  %p301_p3 = pneg %p476_p13 }
  0x16   : > { %s304_s4 = scalar_lea.hbm %s570_s0, 256  ;;  %p305_p5 = scmp.lt.u32.totalorder %s472_s25, %s570_s0 }
  0x17   : > { %p302_p4 = pnand %p301_p3, %p300_p2  ;;  %p306_p8 = scmp.lt.u32.totalorder %s304_s4, %s299_s30 }
  0x18   : > { %p308_p9 = scmp.lt.u32.totalorder %s299_s30, %s472_s25 }
  0x19   : > { %p303_p7 = pneg %p302_p4  ;;  %p307_p10 = por %p306_p8, %p305_p5 }
  0x1b   : > { %p309_p0 = por %p308_p9, %p307_p10 }
  0x1d   : > { %p310_p1 = pnand %p309_p0, %p303_p7 }
  0x1f   : > { %313 = shalt.err (!%p310_p1)
}
  0x20   : > { %s314_s13 = scalar_lea.vmem %s480_s27, 128  ;;  %s397_s14 = smov [#allocation2]  }
  0x21   : > { %p315_p2 = scmp.ne.s32.totalorder %s480_s27, %s314_s13  ;;  %s319_s16 = sshll.u32 %s397_s14, 4  ;;  %s320_s16 = int_to_ptr.vmem [resolvable:$false] %s319_s16 }
  0x22   : > { %s321_s20 = scalar_lea.vmem %s320_s16, 256  ;;  %p322_p11 = scmp.lt.s32.totalorder %s480_s27, %s320_s16 }
  0x23   : > { %p317_p4 = pnand %p315_p2, %p301_p3  ;;  %p323_p5 = scmp.lt.s32.totalorder %s321_s20, %s314_s13 }
  0x25   : > { %p318_p12 = pneg %p317_p4  ;;  %p324_p8 = por %p323_p5, %p322_p11 }
  0x27   : > { %p325_p9 = pnand %p324_p8, %p318_p12 }
  0x29   : > { %328 = shalt.err (!%p325_p9)
}
  0x2a   : > { %260 = dma.hbm_to_vmem [thread:$0]  (!%p476_p13), %s472_s25, 128, %s480_s27, %s88_s29  }
  0x2b   : > { %p578_p0 = scmp.lt.s32.totalorder %s395_s9, 3  ;;  %p579_p1 = scmp.ge.s32.totalorder %s395_s9, 1 }
  0x2d   : > { %p104_p3 = pnand %p579_p1, %p578_p0 }
  0x2e   : > { %s514_s21 = sand.u32 (!%p104_p3), 1, %s387_s7  }
  0x2f   : > { %107 = sbr.rel (%p104_p3) target bundleno = 85 (0x55), region = 24  ;;  %s247_s22 = sshll.u32 (!%p104_p3), %s514_s21, 3 }
  0x30   : > { %s110_s23 = scalar_lea.sflag (!%p104_p3), [#allocation3], %s514_s21  ;;  %s113_s24 = scalar_lea.vmem (!%p104_p3), [#allocation2], %s247_s22 }
  0x36   : > { %374 = dma.done.wait (%p452_p6), %s110_s23, 128  }
  0x37   : > { %376 = vsyncadd (%p452_p6), %s110_s23, 4294967168  ;;  %v132_v0 = vld [vmem:[%s113_s24] sm:$0xff]  ;;  %s131_s17 = scalar_lea.vmem [#allocation5], %s247_s22  ;;  %s250_s26 = sshll.u32 %s430_s10, 7 }
  0x38   : > { %v134_v1 = vmul.f32 0.8462941, %v132_v0  ;;  %vm133_vm0 = vcmp.gt.f32.partialorder %v132_v0, 0.045845147  ;;  %vm137_vm1 = vcmp.gt.f32.partialorder %v132_v0, 0.2  ;;  %s528_s29 = scalar_lea.hbm %s571_s1, %s250_s26 }
  0x39   : > { %v141_v2 = vmul.f32 0.93918145, %v132_v0  ;;  %v145_v5 = vmul.f32 1.0050918, %v132_v0  ;;  %vm140_vm2 = vcmp.gt.f32.partialorder %v132_v0, 0.4 }
  0x3a   : > { %v135_v3 = vadd.f32 -0.038798478, %v134_v1  ;;  %v138_v4 = vadd.f32 -0.03879848, %v134_v1  ;;  %v149_v7 = vmul.f32 1.057131, %v132_v0 }
  0x3b   : > { %v142_v6 = vadd.f32 -0.075953424, %v141_v2  ;;  %vm144_vm3 = vcmp.gt.f32.partialorder %v132_v0, 0.6  ;;  %v146_v9 = vadd.f32 -0.115499675, %v145_v5 }
  0x3c   : > { %v136_v8 = vsel %vm133_vm0, %v135_v3, 0.0  ;;  %vm148_vm4 = vcmp.gt.f32.partialorder %v132_v0, 0.8  ;;  %v150_v11 = vadd.f32 -0.15713108, %v149_v7  ;;  %vm152_vm5 = vcmp.gt.f32.partialorder %v132_v0, 1.0 }
  0x3d   : > { %v139_v10 = vsel %vm137_vm1, %v138_v4, %v136_v8  ;;  %s171_s25 = sshll.u32 %s131_s17, 4  ;;  %vm154_vm6 = vcmp.gt.f32.partialorder %v132_v0, 1.0945957  ;;  %s158_s30 = scalar_lea.sflag [#allocation4], %s514_s21  ;;  %s523_s25 = int_to_ptr.vmem [resolvable:$true] %s171_s25 }
  0x3e   : > { %v143_v12 = vsel %vm140_vm2, %v142_v6, %v139_v10  ;;  %s329_s2 = scalar_lea.vmem %s523_s25, 128  ;;  %p580_p11 = scmp.ne.s32.totalorder %s575_s18, 0 }
  0x3f   : > { %v147_v13 = vsel %vm144_vm3, %v146_v9, %v143_v12  ;;  %p330_p6 = scmp.ne.s32.totalorder %s523_s25, %s329_s2  ;;  %s398_s10 = smov [#allocation5]  }
  0x40   : > { %v151_v14 = vsel %vm148_vm4, %v150_v11, %v147_v13  ;;  %s333_s3 = sshll.u32 %s398_s10, 4  ;;  %s334_s3 = int_to_ptr.vmem [resolvable:$false] %s333_s3 }
  0x41   : > { %v153_v15 = vsel %vm152_vm5, %v150_v11, %v151_v14  ;;  %p331_p12 = pnand %p330_p6, %p580_p11  ;;  %s335_s4 = scalar_lea.vmem %s334_s3, 256 }
  0x42   : > { %v155_v16 = vsel %vm154_vm6, 1.0, %v153_v15  ;;  %p336_p7 = scmp.lt.s32.totalorder %s523_s25, %s334_s3  ;;  %p337_p10 = scmp.lt.s32.totalorder %s335_s4, %s329_s2 }
  0x43   : > { %156 = vst [vmem:[%s131_s17] sm:$0xff] %v155_v16  ;;  %p332_p13 = pneg %p331_p12 }
  0x44   : > { %p338_p2 = por %p337_p10, %p336_p7 }
  0x46   : > { %p339_p4 = pnand %p338_p2, %p332_p13 }
  0x48   : > { %342 = shalt.err (!%p339_p4)
}
  0x49   : > { %s343_s5 = scalar_lea.hbm %s528_s29, 128  ;;  %s347_s14 = scalar_lea.hbm %s571_s1, 256 }
  0x4a   : > { %p344_p5 = scmp.ne.s32.totalorder %s528_s29, %s343_s5  ;;  %p348_p0 = scmp.lt.u32.totalorder %s528_s29, %s571_s1 }
  0x4b   : > { %p349_p1 = scmp.lt.u32.totalorder %s347_s14, %s343_s5  ;;  %p351_p6 = scmp.lt.u32.totalorder %s343_s5, %s528_s29 }
  0x4c   : > { %p345_p8 = pnand %p344_p5, %p580_p11 }
  0x4d   : > { %p350_p3 = por %p349_p1, %p348_p0 }
  0x4e   : > { %p346_p9 = pneg %p345_p8 }
  0x4f   : > { %p352_p12 = por %p351_p6, %p350_p3 }
  0x51   : > { %p353_p13 = pnand %p352_p12, %p346_p9 }
  0x53   : > { %356 = shalt.err (!%p353_p13)
}
  0x54   : > { %255 = dma.vmem_to_hbm [thread:$0]  (%p580_p11), %s523_s25, 128, %s528_s29, %s158_s30  }
  0x55 PF: > { %s183_s21 = sand.u32 1, %s383_s6   ;;  %p581_p7 = scmp.ne.s32.totalorder %s576_s19, 0 }
  0x56   : > { %p582_p10 = scmp.ge.s32.totalorder %s395_s9, 2  ;;  %s184_s22 = scalar_lea.sflag [#allocation4], %s183_s21 }
  0x58   : > { %p262_p2 = pnand %p582_p10, %p581_p7 }
  0x5a   : > { %378 = dma.done.wait (!%p262_p2), %s184_s22, 128  }
  0x5b   : > { %380 = vsyncadd (!%p262_p2), %s184_s22, 4294967168  ;;  %p14_p4 = scmp.ge.s32.totalorder %s434_s12, 4   ;;  %s583_s6 = smov %s387_s7 }
  0x5c   : > { %s584_s7 = smov %s391_s8  ;;  %s585_s8 = smov %s446_s15 }
  0x5d   : > { %s586_s9 = smov %s434_s12  ;;  %16 = sbr.rel (!%p14_p4) target bundleno = 5 (0x5), region = 69 }
  0x64   :  { %189 = vsyncpa [#allocation3], 1 }
  0x65   :  { %191 = vsyncpa [#allocation3 + $0x1], 1 }
  0x66   :  { %192 = vsyncpa [#allocation4], 1 }
  0x67   :  { %194 = vsyncpa [#allocation4 + $0x1], 1 }

</bundles_post_ra>
